<compile_context>
chip_gen: v6e
topology: v6e:2x2x1
jax: 0.10.0
libtpu: 0.0.40
codegen_flags: <defaults>
</compile_context>

<pallas_src>
import functools

import numpy as np
import jax
import jax.numpy as jnp
from jax.experimental import pallas as pl
from jax.experimental.pallas import tpu as pltpu


def _double_conv_kernel(x_ref, w1_ref, b1_ref, w2_ref, b2_ref, m_ref, o_ref, *, W):
    """One batch element per grid step, channels-first.

    x_ref : (1, Cin, P)      input, P = H*W on the lane axis
    w1_ref: (Cin, 9*Cin)     3x3 conv weights, tap-major then input channel
    b1_ref: (Cin, 1)
    w2_ref: (Cout, Cin)      1x1 conv weights
    b2_ref: (Cout, 1)
    m_ref : (9, 1, P)        0/1 halo-validity masks per tap (zero padding)
    o_ref : (1, Cout, P)
    """
    P = x_ref.shape[2]
    x = x_ref[0]  # (Cin, P): channels on sublanes, H*W lane-dense

    # Build im2col (9*Cin, P): each tap is a lane rotation of x with the
    # wrapped / out-of-image positions zeroed by a precomputed mask.
    patches = []
    t = 0
    for ky in range(3):
        for kx in range(3):
            dy, dx = ky - 1, kx - 1
            s = dy * W + dx                    # flat-index shift for this tap
            if s == 0:
                patches.append(x)              # center tap: no shift, no mask
            else:
                shifted = pltpu.roll(x, shift=(-s) % P, axis=1)  # XLU lane rotate
                patches.append(shifted * m_ref[t])               # zero the halo
            t += 1
    im2col = jnp.concatenate(patches, axis=0)  # (9*Cin, P)

    # 3x3 conv as a single MXU contraction: K = 9*Cin, N = H*W (lane-dense).
    h = jnp.dot(w1_ref[...], im2col, preferred_element_type=jnp.float32)
    h = jnp.maximum(h + b1_ref[...], 0.0)      # (Cin, P), bias broadcast on lanes

    # 1x1 conv + ReLU.
    out = jnp.dot(w2_ref[...], h, preferred_element_type=jnp.float32)
    out = jnp.maximum(out + b2_ref[...], 0.0)  # (Cout, P)

    o_ref[0] = out.astype(o_ref.dtype)         # unmasked lane-dense store


def _build_tap_masks(H, W):
    """0/1 validity masks (9, 1, H*W) implementing zero padding for each tap."""
    P = H * W
    row = np.arange(P) // W
    col = np.arange(P) % W
    masks = np.zeros((9, 1, P), np.float32)
    t = 0
    for ky in range(3):
        for kx in range(3):
            dy, dx = ky - 1, kx - 1
            valid = ((row + dy >= 0) & (row + dy < H) &
                     (col + dx >= 0) & (col + dx < W))
            masks[t, 0, :] = valid.astype(np.float32)
            t += 1
    return masks


@jax.jit
def double_conv(x_nchw, w1_oihw, b1, w2_oihw, b2):
    """Matches torch: Conv2d(Cin,Cin,3,pad=1) -> ReLU -> Conv2d(Cin,Cout,1) -> ReLU."""
    N, Cin, H, W = x_nchw.shape
    Cout = w2_oihw.shape[0]
    P = H * W

    # --- glue (cheap / free): flatten spatial dims, reshape tiny weights ---
    x_flat = x_nchw.reshape(N, Cin, P)                                  # free reshape
    # (O, I, 3, 3) -> (O, Ky, Kx, I) -> (O, 9*I): k = (ky*3+kx)*Cin + i
    w1_mat = jnp.transpose(w1_oihw, (0, 2, 3, 1)).reshape(Cin, 9 * Cin)
    w2_mat = w2_oihw[:, :, 0, 0]                                        # (Cout, Cin)
    b1_col = b1.reshape(Cin, 1)
    b2_col = b2.reshape(Cout, 1)
    masks = jnp.asarray(_build_tap_masks(H, W))                         # baked constant

    out_flat = pl.pallas_call(
        functools.partial(_double_conv_kernel, W=W),
        out_shape=jax.ShapeDtypeStruct((N, Cout, P), x_nchw.dtype),
        grid_spec=pltpu.PrefetchScalarGridSpec(
            num_scalar_prefetch=0,
            grid=(N,),
            in_specs=[
                pl.BlockSpec((1, Cin, P), lambda n: (n, 0, 0)),
                pl.BlockSpec((Cin, 9 * Cin), lambda n: (0, 0)),
                pl.BlockSpec((Cin, 1), lambda n: (0, 0)),
                pl.BlockSpec((Cout, Cin), lambda n: (0, 0)),
                pl.BlockSpec((Cout, 1), lambda n: (0, 0)),
                pl.BlockSpec((9, 1, P), lambda n: (0, 0, 0)),
            ],
            out_specs=pl.BlockSpec((1, Cout, P), lambda n: (n, 0, 0)),
        ),
        compiler_params=pltpu.CompilerParams(
            dimension_semantics=("parallel",)),
    )(x_flat, w1_mat, b1_col, w2_mat, b2_col, masks)

    return out_flat.reshape(N, Cout, H, W)      # free reshape back to NCHW


def _reference(x_nchw, w1_oihw, b1, w2_oihw, b2):
    """Pure-JAX reference (same NCHW semantics as torch)."""
    dn = jax.lax.conv_dimension_numbers(x_nchw.shape, w1_oihw.shape,
                                        ("NCHW", "OIHW", "NCHW"))
    y = jax.lax.conv_general_dilated(x_nchw, w1_oihw, (1, 1), ((1, 1), (1, 1)),
                                     dimension_numbers=dn)
    y = jax.nn.relu(y + b1.reshape(1, -1, 1, 1))
    dn2 = jax.lax.conv_dimension_numbers(y.shape, w2_oihw.shape,
                                         ("NCHW", "OIHW", "NCHW"))
    z = jax.lax.conv_general_dilated(y, w2_oihw, (1, 1), ((0, 0), (0, 0)),
                                     dimension_numbers=dn2)
    return jax.nn.relu(z + b2.reshape(1, -1, 1, 1))


if __name__ == "__main__":
    N, Cin, Cout, H, W = 2, 4, 8, 16, 16

    key = jax.random.PRNGKey(0)
    k_x, k_w1, k_b1, k_w2, k_b2 = jax.random.split(key, 5)

    x = jax.random.normal(k_x, (N, Cin, H, W), jnp.float32)
    # Deterministic "synthetic checkpoint" params, torch Conv2d layouts (OIHW).
    w1 = jax.random.normal(k_w1, (Cin, Cin, 3, 3), jnp.float32) * 0.1
    b1 = jax.random.normal(k_b1, (Cin,), jnp.float32) * 0.1
    w2 = jax.random.normal(k_w2, (Cout, Cin, 1, 1), jnp.float32) * 0.1
    b2 = jax.random.normal(k_b2, (Cout,), jnp.float32) * 0.1

    out = double_conv(x, w1, b1, w2, b2)
    jax.block_until_ready(out)

    ref = _reference(x, w1, b1, w2, b2)
    assert out.shape == (N, Cout, H, W)
    assert jnp.allclose(out, ref, atol=1e-4, rtol=1e-4), "mismatch vs reference"

    print("KERNEL_OK")
</pallas_src>

<mosaic_0001>
module attributes {stable_mosaic.version = 11 : i64} {
  func.func @_double_conv_kernel(%arg0: i32, %arg1: memref<1x4x256xf32, #tpu.memory_space<vmem>>, %arg2: memref<4x36xf32, #tpu.memory_space<vmem>>, %arg3: memref<4x1xf32, #tpu.memory_space<vmem>>, %arg4: memref<8x4xf32, #tpu.memory_space<vmem>>, %arg5: memref<8x1xf32, #tpu.memory_space<vmem>>, %arg6: memref<9x1x256xf32, #tpu.memory_space<vmem>>, %arg7: memref<1x8x256xf32, #tpu.memory_space<vmem>>) attributes {dimension_semantics = [#tpu.dimension_semantics<parallel>], iteration_bounds = array<i64: 2>, scalar_prefetch = 0 : i64, scratch_operands = 0 : i64, tpu.core_type = #tpu.core_type<tc>, window_params = [{transform_indices = @transform_0, window_bounds = array<i64: 1, 4, 256>}, {pipeline_mode = #tpu.pipeline_mode<synchronous>, transform_indices = @transform_1, window_bounds = array<i64: 4, 36>}, {pipeline_mode = #tpu.pipeline_mode<synchronous>, transform_indices = @transform_2, window_bounds = array<i64: 4, 1>}, {pipeline_mode = #tpu.pipeline_mode<synchronous>, transform_indices = @transform_3, window_bounds = array<i64: 8, 4>}, {pipeline_mode = #tpu.pipeline_mode<synchronous>, transform_indices = @transform_4, window_bounds = array<i64: 8, 1>}, {pipeline_mode = #tpu.pipeline_mode<synchronous>, transform_indices = @transform_5, window_bounds = array<i64: 9, 1, 256>}, {transform_indices = @transform_6, window_bounds = array<i64: 1, 8, 256>}]} {
    %c0 = arith.constant 0 : index
    %c0_0 = arith.constant 0 : index
    %c0_1 = arith.constant 0 : index
    %0 = vector.load %arg1[%c0, %c0_0, %c0_1] : memref<1x4x256xf32, #tpu.memory_space<vmem>>, vector<1x4x256xf32>
    %1 = vector.shape_cast %0 : vector<1x4x256xf32> to vector<4x256xf32>
    %c17_i32 = arith.constant 17 : i32
    %2 = tpu.dynamic_rotate %1 by %c17_i32 dim 1 : vector<4x256xf32>, i32 -> vector<4x256xf32>
    %c0_2 = arith.constant 0 : index
    %c0_3 = arith.constant 0 : index
    %c0_4 = arith.constant 0 : index
    %3 = vector.load %arg6[%c0_2, %c0_3, %c0_4] : memref<9x1x256xf32, #tpu.memory_space<vmem>>, vector<1x1x256xf32>
    %4 = vector.shape_cast %3 : vector<1x1x256xf32> to vector<1x256xf32>
    %5 = vector.broadcast %4 : vector<1x256xf32> to vector<4x256xf32>
    %6 = arith.mulf %2, %5 : vector<4x256xf32>
    %c16_i32 = arith.constant 16 : i32
    %7 = tpu.dynamic_rotate %1 by %c16_i32 dim 1 : vector<4x256xf32>, i32 -> vector<4x256xf32>
    %c1 = arith.constant 1 : index
    %c0_5 = arith.constant 0 : index
    %c0_6 = arith.constant 0 : index
    %8 = vector.load %arg6[%c1, %c0_5, %c0_6] : memref<9x1x256xf32, #tpu.memory_space<vmem>>, vector<1x1x256xf32>
    %9 = vector.shape_cast %8 : vector<1x1x256xf32> to vector<1x256xf32>
    %10 = vector.broadcast %9 : vector<1x256xf32> to vector<4x256xf32>
    %11 = arith.mulf %7, %10 : vector<4x256xf32>
    %c15_i32 = arith.constant 15 : i32
    %12 = tpu.dynamic_rotate %1 by %c15_i32 dim 1 : vector<4x256xf32>, i32 -> vector<4x256xf32>
    %c2 = arith.constant 2 : index
    %c0_7 = arith.constant 0 : index
    %c0_8 = arith.constant 0 : index
    %13 = vector.load %arg6[%c2, %c0_7, %c0_8] : memref<9x1x256xf32, #tpu.memory_space<vmem>>, vector<1x1x256xf32>
    %14 = vector.shape_cast %13 : vector<1x1x256xf32> to vector<1x256xf32>
    %15 = vector.broadcast %14 : vector<1x256xf32> to vector<4x256xf32>
    %16 = arith.mulf %12, %15 : vector<4x256xf32>
    %c1_i32 = arith.constant 1 : i32
    %17 = tpu.dynamic_rotate %1 by %c1_i32 dim 1 : vector<4x256xf32>, i32 -> vector<4x256xf32>
    %c3 = arith.constant 3 : index
    %c0_9 = arith.constant 0 : index
    %c0_10 = arith.constant 0 : index
    %18 = vector.load %arg6[%c3, %c0_9, %c0_10] : memref<9x1x256xf32, #tpu.memory_space<vmem>>, vector<1x1x256xf32>
    %19 = vector.shape_cast %18 : vector<1x1x256xf32> to vector<1x256xf32>
    %20 = vector.broadcast %19 : vector<1x256xf32> to vector<4x256xf32>
    %21 = arith.mulf %17, %20 : vector<4x256xf32>
    %c255_i32 = arith.constant 255 : i32
    %22 = tpu.dynamic_rotate %1 by %c255_i32 dim 1 : vector<4x256xf32>, i32 -> vector<4x256xf32>
    %c5 = arith.constant 5 : index
    %c0_11 = arith.constant 0 : index
    %c0_12 = arith.constant 0 : index
    %23 = vector.load %arg6[%c5, %c0_11, %c0_12] : memref<9x1x256xf32, #tpu.memory_space<vmem>>, vector<1x1x256xf32>
    %24 = vector.shape_cast %23 : vector<1x1x256xf32> to vector<1x256xf32>
    %25 = vector.broadcast %24 : vector<1x256xf32> to vector<4x256xf32>
    %26 = arith.mulf %22, %25 : vector<4x256xf32>
    %c241_i32 = arith.constant 241 : i32
    %27 = tpu.dynamic_rotate %1 by %c241_i32 dim 1 : vector<4x256xf32>, i32 -> vector<4x256xf32>
    %c6 = arith.constant 6 : index
    %c0_13 = arith.constant 0 : index
    %c0_14 = arith.constant 0 : index
    %28 = vector.load %arg6[%c6, %c0_13, %c0_14] : memref<9x1x256xf32, #tpu.memory_space<vmem>>, vector<1x1x256xf32>
    %29 = vector.shape_cast %28 : vector<1x1x256xf32> to vector<1x256xf32>
    %30 = vector.broadcast %29 : vector<1x256xf32> to vector<4x256xf32>
    %31 = arith.mulf %27, %30 : vector<4x256xf32>
    %c240_i32 = arith.constant 240 : i32
    %32 = tpu.dynamic_rotate %1 by %c240_i32 dim 1 : vector<4x256xf32>, i32 -> vector<4x256xf32>
    %c7 = arith.constant 7 : index
    %c0_15 = arith.constant 0 : index
    %c0_16 = arith.constant 0 : index
    %33 = vector.load %arg6[%c7, %c0_15, %c0_16] : memref<9x1x256xf32, #tpu.memory_space<vmem>>, vector<1x1x256xf32>
    %34 = vector.shape_cast %33 : vector<1x1x256xf32> to vector<1x256xf32>
    %35 = vector.broadcast %34 : vector<1x256xf32> to vector<4x256xf32>
    %36 = arith.mulf %32, %35 : vector<4x256xf32>
    %c239_i32 = arith.constant 239 : i32
    %37 = tpu.dynamic_rotate %1 by %c239_i32 dim 1 : vector<4x256xf32>, i32 -> vector<4x256xf32>
    %c8 = arith.constant 8 : index
    %c0_17 = arith.constant 0 : index
    %c0_18 = arith.constant 0 : index
    %38 = vector.load %arg6[%c8, %c0_17, %c0_18] : memref<9x1x256xf32, #tpu.memory_space<vmem>>, vector<1x1x256xf32>
    %39 = vector.shape_cast %38 : vector<1x1x256xf32> to vector<1x256xf32>
    %40 = vector.broadcast %39 : vector<1x256xf32> to vector<4x256xf32>
    %41 = arith.mulf %37, %40 : vector<4x256xf32>
    %42 = tpu.concatenate %6, %11, %16, %21, %1, %26, %31, %36, %41 in 0 : vector<4x256xf32>, vector<4x256xf32>, vector<4x256xf32>, vector<4x256xf32>, vector<4x256xf32>, vector<4x256xf32>, vector<4x256xf32>, vector<4x256xf32>, vector<4x256xf32> -> vector<36x256xf32>
    %c0_19 = arith.constant 0 : index
    %c0_20 = arith.constant 0 : index
    %43 = vector.load %arg2[%c0_19, %c0_20] : memref<4x36xf32, #tpu.memory_space<vmem>>, vector<4x36xf32>
    %cst = arith.constant dense<0.000000e+00> : vector<4x256xf32>
    %44 = tpu.matmul %43, %42, %cst {dimension_numbers = #tpu.dot_dimension_numbers<[1], [0], [0], [1], [0, 0, 1, 1], [], []>} : vector<4x36xf32>, vector<36x256xf32>, vector<4x256xf32> -> vector<4x256xf32>
    %c0_21 = arith.constant 0 : index
    %c0_22 = arith.constant 0 : index
    %45 = vector.load %arg3[%c0_21, %c0_22] : memref<4x1xf32, #tpu.memory_space<vmem>>, vector<4x1xf32>
    %46 = vector.broadcast %45 : vector<4x1xf32> to vector<4x256xf32>
    %47 = arith.addf %44, %46 : vector<4x256xf32>
    %cst_23 = arith.constant 0.000000e+00 : f32
    %48 = vector.broadcast %cst_23 : f32 to vector<4x256xf32>
    %49 = arith.maximumf %47, %48 : vector<4x256xf32>
    %c0_24 = arith.constant 0 : index
    %c0_25 = arith.constant 0 : index
    %50 = vector.load %arg4[%c0_24, %c0_25] : memref<8x4xf32, #tpu.memory_space<vmem>>, vector<8x4xf32>
    %cst_26 = arith.constant dense<0.000000e+00> : vector<8x256xf32>
    %51 = tpu.matmul %50, %49, %cst_26 {dimension_numbers = #tpu.dot_dimension_numbers<[1], [0], [0], [1], [0, 0, 1, 1], [], []>} : vector<8x4xf32>, vector<4x256xf32>, vector<8x256xf32> -> vector<8x256xf32>
    %c0_27 = arith.constant 0 : index
    %c0_28 = arith.constant 0 : index
    %52 = vector.load %arg5[%c0_27, %c0_28] : memref<8x1xf32, #tpu.memory_space<vmem>>, vector<8x1xf32>
    %53 = vector.broadcast %52 : vector<8x1xf32> to vector<8x256xf32>
    %54 = arith.addf %51, %53 : vector<8x256xf32>
    %cst_29 = arith.constant 0.000000e+00 : f32
    %55 = vector.broadcast %cst_29 : f32 to vector<8x256xf32>
    %56 = arith.maximumf %54, %55 : vector<8x256xf32>
    %c0_30 = arith.constant 0 : index
    %c0_31 = arith.constant 0 : index
    %c0_32 = arith.constant 0 : index
    %57 = vector.load %arg7[%c0_30, %c0_31, %c0_32] : memref<1x8x256xf32, #tpu.memory_space<vmem>>, vector<1x8x256xf32>
    %58 = vector.shape_cast %57 : vector<1x8x256xf32> to vector<8x256xf32>
    %59 = vector.shape_cast %56 : vector<8x256xf32> to vector<1x8x256xf32>
    tpu.vector_store %arg7[%c0_30, %c0_31, %c0_32], %59 {strides = array<i32>} : memref<1x8x256xf32, #tpu.memory_space<vmem>>, vector<1x8x256xf32>,
    return
  }
  func.func @transform_0(%arg0: i32) -> (i32, i32, i32) {
    %c0_i32 = arith.constant 0 : i32
    %c0_i32_0 = arith.constant 0 : i32
    %c0_i32_1 = arith.constant 0 : i32
    return %arg0, %c0_i32, %c0_i32_0 : i32, i32, i32
  }
  func.func @transform_1(%arg0: i32) -> (i32, i32) {
    %c0_i32 = arith.constant 0 : i32
    %c0_i32_0 = arith.constant 0 : i32
    %c0_i32_1 = arith.constant 0 : i32
    return %c0_i32, %c0_i32_0 : i32, i32
  }
  func.func @transform_2(%arg0: i32) -> (i32, i32) {
    %c0_i32 = arith.constant 0 : i32
    %c0_i32_0 = arith.constant 0 : i32
    %c0_i32_1 = arith.constant 0 : i32
    return %c0_i32, %c0_i32_0 : i32, i32
  }
  func.func @transform_3(%arg0: i32) -> (i32, i32) {
    %c0_i32 = arith.constant 0 : i32
    %c0_i32_0 = arith.constant 0 : i32
    %c0_i32_1 = arith.constant 0 : i32
    return %c0_i32, %c0_i32_0 : i32, i32
  }
  func.func @transform_4(%arg0: i32) -> (i32, i32) {
    %c0_i32 = arith.constant 0 : i32
    %c0_i32_0 = arith.constant 0 : i32
    %c0_i32_1 = arith.constant 0 : i32
    return %c0_i32, %c0_i32_0 : i32, i32
  }
  func.func @transform_5(%arg0: i32) -> (i32, i32, i32) {
    %c0_i32 = arith.constant 0 : i32
    %c0_i32_0 = arith.constant 0 : i32
    %c0_i32_1 = arith.constant 0 : i32
    %c0_i32_2 = arith.constant 0 : i32
    return %c0_i32, %c0_i32_0, %c0_i32_1 : i32, i32, i32
  }
  func.func @transform_6(%arg0: i32) -> (i32, i32, i32) {
    %c0_i32 = arith.constant 0 : i32
    %c0_i32_0 = arith.constant 0 : i32
    %c0_i32_1 = arith.constant 0 : i32
    return %arg0, %c0_i32, %c0_i32_0 : i32, i32, i32
  }
}

</mosaic_0001>

<bundles_post_ra>
// kernel: double_conv.1
= control target key start
LH: loop header
LB: loop body
LE: loop exit
PB: predicated region body
PF: predicated region fallthrough
CT: control target
= control target key end

     0   :  { %s803_s21 = smov 0   ;;  %s938_s0 = inlined_call_operand.vmem [shape: f32[2,4,256], index: 0, kind: input, shape index: {}]   ;;  %s939_s1 = inlined_call_operand.vmem [shape: f32[4,36], index: 1, kind: input, shape index: {}]   ;;  %s940_s2 = inlined_call_operand.vmem [shape: f32[4,1], index: 2, kind: input, shape index: {}]   ;;  %s941_s3 = inlined_call_operand.vmem [shape: f32[8,4], index: 3, kind: input, shape index: {}]   ;;  %s942_s4 = inlined_call_operand.vmem [shape: f32[8,1], index: 4, kind: input, shape index: {}]   ;;  %s943_s5 = inlined_call_operand.vmem [shape: f32[9,1,256], index: 5, kind: input, shape index: {}]   ;;  %s944_s6 = inlined_call_operand.vmem [shape: f32[2,8,256], index: 6, kind: output, shape index: {}]  }
   0x1 LB: > { %s703_s22 = sadd.s32 4294967295, %s756_s21   ;;  %p707_p0 = scmp.ge.s32.totalorder %s756_s21, 1  ;;  %s756_s21 = sphi %s803_s21, %s16_s21  }
   0x2   : > { %p212_p1 = scmp.lt.s32.totalorder %s756_s21, 3 }
   0x4   : > { %p213_p2 = pnand %p707_p0, %p212_p1 }
   0x5   : > { %p242_p3 = scmp.lt.s32.totalorder (!%p213_p2), %s703_s22, 1  ;;  %s758_s27 = smov (!%p213_p2), 111  }
   0x6   : > { %216 = sbr.rel (%p213_p2) target bundleno = 565 (0x235), region = 44  ;;  %s759_s28 = smov (!%p213_p2), 112  }
   0x7   : > { %s760_s29 = smov (!%p213_p2), 127   ;;  %s761_s30 = smov (!%p213_p2), 113  }
   0x8   : > { %s762_s7 = smov (!%p213_p2), 1   ;;  %s763_s8 = smov (!%p213_p2), 16  }
   0x9   : > { %s766_s9 = smov (!%p213_p2), 15   ;;  %s767_s10 = smov (!%p213_p2), 17  }
   0xb   : > { %s946_s22 = smov (!%p242_p3, %s703_s22), 1  ;;  %v764_v2 = vmov 0.0   ;;  %v765_v3 = vmov 0   ;;  %v467_v4 = vld [vmem:[%s940_s2] sm:$0xf]  ;;  %v260_v5 = vlaneseq  ;;  %vm457_vm1 = vcmask 1043456  }
   0xc   : > { %s727_s23 = sshll.u32 %s946_s22, 3  ;;  %547 = vmatprep.mubr.f32.mxu0 %v764_v2  ;;  %637 = vmatprep.mubr.f32.mxu1 %v764_v2  ;;  %v718_v10 = vld [vmem:[%s943_s5 + $0x10] sm:$0x3]  ;;  %v715_v15 = vld [vmem:[%s943_s5 + $0xa] sm:$0x3]  ;;  %vm473_vm9 = vcmask 293888  }
   0xd   : > { %s246_s26 = scalar_lea.vmem %s938_s0, %s727_s23  ;;  %747 = vset.pattern.permute.xlu0 %v765_v3  ;;  %748 = vset.pattern.permute.xlu1 %v765_v3  ;;  %v268_v6 = vshrl.u32 %v260_v5, 7  ;;  %v842_v7 = vand.u32 127, %v260_v5  ;;  %v717_v16 = vld [vmem:[%s943_s5 + $0xe] sm:$0x3]  ;;  %v716_v22 = vld [vmem:[%s943_s5 + $0xc] sm:$0x3] }
   0xe   : > { %v817_v0 = vld [vmem:[%s246_s26] sm:$0xff]  ;;  %vm563_vm10 = vcmask 31744   ;;  %s728_s13 = sshll.u32 %s946_s22, 4 }
   0xf   : > { %411 = vrot.lane.b32.xlu1 %v817_v0, %s758_s27  ;;  %389 = vrot.lane.b32.xlu0 %v817_v0, %s759_s28  ;;  %v823_v1 = vcombine.high %v817_v0, %v817_v0  ;;  %v844_v8 = vsub.s32 0, %v268_v6  ;;  %v846_v9 = vsub.s32 1, %v268_v6  ;;  %vm415_vm0 = vcmp.lt.s32.totalorder %v842_v7, 111  ;;  %v714_v49 = vld [vmem:[%s943_s5 + $0x6] sm:$0x3]  ;;  %s251_s16 = scalar_lea.vmem %s944_s6, %s728_s13 }
  0x10   : > { %vm349_vm2 = vcmp.lt.s32.totalorder %v842_v7, 127  ;;  %vm393_vm3 = vcmp.lt.s32.totalorder %v842_v7, 112  ;;  %vm371_vm4 = vcmp.lt.s32.totalorder %v842_v7, 113  ;;  %vm327_vm5 = vcmp.lt.s32.totalorder %v842_v7, 1  ;;  %v712_v60 = vld [vmem:[%s943_s5 + $0x2] sm:$0x3] }
  0x11   : > { %v424_v13 = vrot.slane %v718_v10, %v844_v8  ;;  %v428_v14 = vrot.slane %v718_v10, %v846_v9  ;;  %v362_v21 = vrot.slane %v715_v15, %v846_v9  ;;  %v402_v25 = vrot.slane %v717_v16, %v844_v8  ;;  %v713_v62 = vld [vmem:[%s943_s5 + $0x4] sm:$0x3]  ;;  %v265_v5 = vld [vmem:[%s943_s5] sm:$0x3] }
  0x12   : > { %v406_v26 = vrot.slane %v717_v16, %v846_v9  ;;  %v358_v27 = vrot.slane %v715_v15, %v844_v8  ;;  %v380_v30 = vrot.slane %v716_v22, %v844_v8  ;;  %v384_v38 = vrot.slane %v716_v22, %v846_v9 }
  0x13   : > { %345 = vrot.lane.b32.xlu0 %v817_v0, %s760_s29  ;;  %413 = vrot.lane.b32.xlu1 %v823_v1, %s758_s27  ;;  %v336_v55 = vrot.slane %v714_v49, %v844_v8  ;;  %v340_v56 = vrot.slane %v714_v49, %v846_v9  ;;  %vm283_vm6 = vcmp.lt.s32.totalorder %v842_v7, 16  ;;  %v296_v6 = vrot.slane %v712_v60, %v846_v9 }
  0x14   : > { %vm305_vm7 = vcmp.lt.s32.totalorder %v842_v7, 15  ;;  %v318_v10 = vrot.slane %v713_v62, %v846_v9  ;;  %vm262_vm8 = vcmp.lt.s32.totalorder %v842_v7, 17  ;;  %v270_v15 = vrot.slane %v265_v5, %v844_v8  ;;  %v557_v7 = vld [vmem:[%s942_s4] sm:$0xff] }
  0x15   : > { %v274_v16 = vrot.slane %v265_v5, %v846_v9 }
  0x17   : > { %347 = vrot.lane.b32.xlu1 %v823_v1, %s760_s29  ;;  %391 = vrot.lane.b32.xlu0 %v823_v1, %s759_s28 }
  0x1b   : > { %369 = vrot.lane.b32.xlu1 %v823_v1, %s761_s30  ;;  %367 = vrot.lane.b32.xlu0 %v817_v0, %s761_s30 }
  0x1f   : > { %325 = vrot.lane.b32.xlu1 %v823_v1, %s762_s7  ;;  %323 = vrot.lane.b32.xlu0 %v817_v0, %s762_s7 }
  0x23   : > { %281 = vrot.lane.b32.xlu1 %v823_v1, %s763_s8  ;;  %279 = vrot.lane.b32.xlu0 %v817_v0, %s763_s8 }
  0x27   : > { %303 = vrot.lane.b32.xlu1 %v823_v1, %s766_s9  ;;  %301 = vrot.lane.b32.xlu0 %v817_v0, %s766_s9 }
  0x2b   : > { %258 = vrot.lane.b32.xlu1 %v823_v1, %s767_s10  ;;  %256 = vrot.lane.b32.xlu0 %v817_v0, %s767_s10 }
  0x2f   : > { %470 = vperm.xlu0 %747, %v467_v4   ;;  %560 = vperm.xlu1 %748, %v557_v7  }
  0x81   : > { %v412_v11 = vpop.permute.xlu1 %411  ;;  %v390_v12 = vpop.permute.xlu0 %389 }
  0x85   : > { %v346_v17 = vpop.permute.xlu0 %345  ;;  %v414_v18 = vpop.permute.xlu1 %413 }
  0x86   : > { %v416_v19 = vsel %vm415_vm0, %v412_v11, %v414_v18  ;;  %v417_v20 = vsel %vm415_vm0, %v414_v18, %v412_v11 }
  0x87   : > { %v431_v23 = vmul.f32 %v424_v13, %v416_v19  ;;  %v432_v24 = vmul.f32 %v428_v14, %v417_v20 }
  0x89   : > { %719 = vmatprep.subr.msk.mxu0 %vm457_vm1, %v432_v24  ;;  %v348_v28 = vpop.permute.xlu1 %347  ;;  %v392_v29 = vpop.permute.xlu0 %391 }
  0x8a   : > { %v350_v31 = vsel %vm349_vm2, %v346_v17, %v348_v28  ;;  %v351_v32 = vsel %vm349_vm2, %v348_v28, %v346_v17  ;;  %v394_v33 = vsel %vm393_vm3, %v390_v12, %v392_v29  ;;  %v395_v34 = vsel %vm393_vm3, %v392_v29, %v390_v12  ;;  %720 = vmatpush1.msk.msra.mxu0 %vm457_vm1, %v431_v23 }
  0x8b   : > { %v366_v35 = vmul.f32 %v362_v21, %v351_v32  ;;  %v409_v36 = vmul.f32 %v402_v25, %v394_v33  ;;  %v410_v37 = vmul.f32 %v406_v26, %v395_v34  ;;  %v365_v39 = vmul.f32 %v358_v27, %v350_v31 }
  0x8d   : > { %v370_v40 = vpop.permute.xlu1 %369  ;;  %v368_v41 = vpop.permute.xlu0 %367  ;;  %v448_v42 = vrot.slane %v366_v35, 4  ;;  %v453_v45 = vrot.slane %v409_v36, 4  ;;  %v454_v46 = vrot.slane %v410_v37, 4  ;;  %v447_v50 = vrot.slane %v365_v39, 4  ;;  %v466_v35 = vld [vmem:[%s939_s1] sm:$0xf] }
  0x8e   : > { %v372_v43 = vsel %vm371_vm4, %v368_v41, %v370_v40  ;;  %v373_v44 = vsel %vm371_vm4, %v370_v40, %v368_v41 }
  0x8f   : > { %v387_v47 = vmul.f32 %v380_v30, %v372_v43  ;;  %v388_v48 = vmul.f32 %v384_v38, %v373_v44  ;;  %v463_v59 = vsel %vm457_vm1, %v823_v1, %v448_v42  ;;  %v462_v61 = vsel %vm457_vm1, %v817_v0, %v447_v50  ;;  %v556_v43 = vld [vmem:[%s941_s3] sm:$0xff] }
  0x90   : > { %v292_v1 = vrot.slane %v712_v60, %v844_v8  ;;  %v314_v0 = vrot.slane %v713_v62, %v844_v8 }
  0x91   : > { %v326_v51 = vpop.permute.xlu1 %325  ;;  %v324_v52 = vpop.permute.xlu0 %323  ;;  %v465_v53 = vsel %vm457_vm1, %v388_v48, %v454_v46  ;;  %v464_v54 = vsel %vm457_vm1, %v387_v47, %v453_v45 }
  0x92   : > { %507 = vmatprep.subr.mxu0 %v465_v53  ;;  %v328_v57 = vsel %vm327_vm5, %v324_v52, %v326_v51  ;;  %v329_v58 = vsel %vm327_vm5, %v326_v51, %v324_v52 }
  0x93   : > { %508 = vmatpush1.msra.mxu0 %v464_v54  ;;  %v343_v3 = vmul.f32 %v336_v55, %v329_v58  ;;  %v344_v4 = vmul.f32 %v340_v56, %v328_v57 }
  0x94   : > { %509 = vmatprep.subr.mxu0 %v463_v59 }
  0x95   : > { %v282_v63 = vpop.permute.xlu1 %281  ;;  %510 = vmatpush1.msra.mxu0 %v462_v61  ;;  %v280_v2 = vpop.permute.xlu0 %279  ;;  %v441_v17 = vrot.slane %v343_v3, 4  ;;  %v442_v18 = vrot.slane %v344_v4, 4 }
  0x96   : > { %v284_v11 = vsel %vm283_vm6, %v280_v2, %v282_v63  ;;  %v285_v12 = vsel %vm283_vm6, %v282_v63, %v280_v2 }
  0x97   : > { %v299_v21 = vmul.f32 %v292_v1, %v285_v12  ;;  %v300_v22 = vmul.f32 %v296_v6, %v284_v11 }
  0x99   : > { %v304_v13 = vpop.permute.xlu1 %303  ;;  %v302_v14 = vpop.permute.xlu0 %301  ;;  %v435_v9 = vrot.slane %v299_v21, 4  ;;  %v436_v30 = vrot.slane %v300_v22, 4 }
  0x9a   : > { %v306_v19 = vsel %vm305_vm7, %v302_v14, %v304_v13  ;;  %v307_v20 = vsel %vm305_vm7, %v304_v13, %v302_v14 }
  0x9b   : > { %v321_v23 = vmul.f32 %v314_v0, %v307_v20  ;;  %v322_v24 = vmul.f32 %v318_v10, %v306_v19 }
  0x9d   : > { %v259_v25 = vpop.permute.xlu1 %258  ;;  %v257_v26 = vpop.permute.xlu0 %256  ;;  %v461_v27 = vsel %vm457_vm1, %v322_v24, %v442_v18  ;;  %v460_v28 = vsel %vm457_vm1, %v321_v23, %v441_v17 }
  0x9e   : > { %v263_v29 = vsel %vm262_vm8, %v257_v26, %v259_v25  ;;  %v264_v8 = vsel %vm262_vm8, %v259_v25, %v257_v26  ;;  %511 = vmatprep.subr.mxu0 %v461_v27 }
  0x9f   : > { %v277_v31 = vmul.f32 %v270_v15, %v264_v8  ;;  %v278_v32 = vmul.f32 %v274_v16, %v263_v29  ;;  %512 = vmatpush1.msra.mxu0 %v460_v28 }
  0xa1   : > { %v459_v33 = vsel %vm457_vm1, %v278_v32, %v436_v30  ;;  %v458_v34 = vsel %vm457_vm1, %v277_v31, %v435_v9 }
  0xa2   : > { %513 = vmatprep.subr.mxu0 %v459_v33 }
  0xa3   : > { %514 = vmatpush1.msra.mxu0 %v458_v34 }
  0xa4   : > { %721 = vmatmul.mubr.msk.f32.vlgmr.msra.gmra.mxu0 %vm473_vm9, %v466_v35 }
  0xaa   : > { %v471_v36 = vpop.permute.xlu0 %470  ;;  %v561_v44 = vpop.permute.xlu1 %560 }
 0x164   : > { %v549_v37 = vpop.f32.mrf.mxu0 }
 0x165   : > { %v550_v38 = vadd.f32 %v549_v37, %v471_v36 }
 0x166   : > { %v551_v39 = vpop.f32.mrf.mxu0 }
 0x167   : > { %v552_v40 = vadd.f32 %v551_v39, %v471_v36  ;;  %v554_v42 = vmax.f32 %v550_v38, 0.0 }
 0x169   : > { %v555_v41 = vmax.f32 %v552_v40, 0.0 }
 0x16b   : > { %722 = vmatprep.subr.msk.mxu1 %vm457_vm1, %v555_v41 }
 0x16c   : > { %723 = vmatpush1.msk.msra.mxu1 %vm457_vm1, %v554_v42 }
 0x16d   : > { %724 = vmatmul.mubr.msk.f32.vlgmr.msra.gmra.mxu1 %vm563_vm10, %v556_v43 }
 0x22d   : > { %v639_v45 = vpop.f32.mrf.mxu1 }
 0x22e   : > { %v640_v46 = vadd.f32 %v639_v45, %v561_v44 }
 0x22f   : > { %v641_v47 = vpop.f32.mrf.mxu1 }
 0x230   : > { %v644_v48 = vmax.f32 %v640_v46, 0.0  ;;  %v642_v49 = vadd.f32 %v641_v47, %v561_v44 }
 0x232   : > { %646 = vst [vmem:[%s251_s16] sm:$0xff] %v644_v48  ;;  %v645_v50 = vmax.f32 %v642_v49, 0.0 }
 0x234   : > { %647 = vst [vmem:[%s251_s16 + $0x8] sm:$0xff] %v645_v50 }
 0x235 PF: > { %s16_s21 = sadd.s32 1, %s756_s21  }
 0x236   : > { %p13_p4 = scmp.ge.s32.totalorder %s16_s21, 4  }
 0x238   :  { %15 = sbr.rel (!%p13_p4) target bundleno = 1 (0x1), region = 81 }

</bundles_post_ra>
